<compile_context>
chip_gen: v6e
topology: v6e:2x2x1
jax: 0.10.0
libtpu: 0.0.40
codegen_flags: <defaults>
</compile_context>

<pallas_src>
import functools

import jax
import jax.numpy as jnp
from jax.experimental import pallas as pl
from jax.experimental.pallas import tpu as pltpu

LANES = 128
MAX_ROW_TILE = 2048  # 2048 x 128 f32 = 1 MiB per input per block


def _round_up(x, m):
    return ((x + m - 1) // m) * m


def _masked_sqdiff_kernel(rows, row_tile, out_ref, tgt_ref, mask_ref,
                          sum_ref, cnt_ref):
    i = pl.program_id(0)

    o = out_ref[...].astype(jnp.float32)
    t = tgt_ref[...].astype(jnp.float32)
    m = mask_ref[...]

    # Row-validity mask for a (possibly partial) last block: rows beyond the
    # logical array extent hold uninitialized VMEM and must contribute nothing
    # to either the squared-diff sum or the count.
    row_ids = jax.lax.broadcasted_iota(jnp.int32, (row_tile, LANES), 0)
    valid = row_ids < (rows - i * row_tile)

    sel = (m > 0) & valid
    d = o - t
    sq = jnp.where(sel, d * d, jnp.float32(0.0))   # where (not mul): no NaN leak
    cnt = sel.astype(jnp.float32)

    # Intra-tile reduction to one (8, 128) vreg per quantity: vreg-wise VPU
    # adds only; the final cross-lane reduce happens outside in XLA.
    sum_ref[0] = sq.reshape(row_tile // 8, 8, LANES).sum(axis=0)
    cnt_ref[0] = cnt.reshape(row_tile // 8, 8, LANES).sum(axis=0)


def loss_mse(out, target, possible_mask, CT_structure_mask=None):
    """Masked MSE: mean((out - target)^2) over elements where possible_mask > 0."""
    del CT_structure_mask  # unused, same as the PyTorch module

    out_f = jnp.asarray(out).reshape(-1)
    tgt_f = jnp.asarray(target).reshape(-1)
    msk_f = jnp.asarray(possible_mask).reshape(-1)

    n = out_f.shape[0]

    # Zero-copy lane-dense view when possible; pad (mask=0) only as a fallback
    # for sizes that are not a multiple of 128.
    if n % LANES != 0:
        pad = _round_up(n, LANES) - n
        out_f = jnp.pad(out_f, (0, pad))
        tgt_f = jnp.pad(tgt_f, (0, pad))
        msk_f = jnp.pad(msk_f, (0, pad))

    out2 = out_f.reshape(-1, LANES)
    tgt2 = tgt_f.reshape(-1, LANES)
    msk2 = msk_f.reshape(-1, LANES)

    rows = out2.shape[0]
    row_tile = min(MAX_ROW_TILE, _round_up(rows, 8))
    nb = pl.cdiv(rows, row_tile)

    in_spec = pl.BlockSpec((row_tile, LANES), lambda i: (i, 0))
    out_spec = pl.BlockSpec((1, 8, LANES), lambda i: (i, 0, 0))

    bytes_in = (out2.size * out2.dtype.itemsize
                + tgt2.size * tgt2.dtype.itemsize
                + msk2.size * msk2.dtype.itemsize)
    bytes_out = 2 * nb * 8 * LANES * 4

    sums, cnts = pl.pallas_call(
        functools.partial(_masked_sqdiff_kernel, rows, row_tile),
        out_shape=(
            jax.ShapeDtypeStruct((nb, 8, LANES), jnp.float32),
            jax.ShapeDtypeStruct((nb, 8, LANES), jnp.float32),
        ),
        grid=(nb,),
        in_specs=[in_spec, in_spec, in_spec],
        out_specs=(out_spec, out_spec),
        compiler_params=pltpu.CompilerParams(
            dimension_semantics=("parallel",),       # independent blocks -> 2 TCs on v7x
            vmem_limit_bytes=32 * 1024 * 1024,       # 3 in x 2 buf x 1 MiB fits everywhere
        ),
        cost_estimate=pl.CostEstimate(
            flops=5 * n,
            transcendentals=0,
            bytes_accessed=bytes_in + bytes_out,
        ),
    )(out2, tgt2, msk2)

    # Tiny epilogue reduce + mean.  Division by zero (empty selection) yields
    # NaN, matching torch.nn.MSELoss on an empty selection.
    return jnp.sum(sums) / jnp.sum(cnts)


if __name__ == "__main__":
    key = jax.random.PRNGKey(0)
    k1, k2, k3 = jax.random.split(key, 3)

    B, C, H, W = 2, 4, 16, 16  # NCHW, small synthetic shapes
    out = jax.random.normal(k1, (B, C, H, W), dtype=jnp.float32)
    target = jax.random.normal(k2, (B, C, H, W), dtype=jnp.float32)
    possible_mask = (jax.random.uniform(k3, (B, C, H, W)) > 0.5).astype(jnp.float32)
    CT_structure_mask = jnp.ones((B, C, H, W), dtype=jnp.float32)  # unused

    loss = loss_mse(out, target, possible_mask, CT_structure_mask)
    loss = jax.block_until_ready(loss)

    # Reference check (plain JAX).
    sel = possible_mask > 0
    ref = jnp.sum(jnp.where(sel, (out - target) ** 2, 0.0)) / jnp.sum(sel)
    assert jnp.allclose(loss, ref, rtol=1e-5, atol=1e-6), (loss, ref)

    print("KERNEL_OK")
</pallas_src>

<mosaic_0001>
module attributes {stable_mosaic.version = 11 : i64} {
  func.func @_masked_sqdiff_kernel(%arg0: i32, %arg1: memref<16x128xf32, #tpu.memory_space<vmem>>, %arg2: memref<16x128xf32, #tpu.memory_space<vmem>>, %arg3: memref<16x128xf32, #tpu.memory_space<vmem>>, %arg4: memref<1x8x128xf32, #tpu.memory_space<vmem>>, %arg5: memref<1x8x128xf32, #tpu.memory_space<vmem>>) attributes {dimension_semantics = [#tpu.dimension_semantics<parallel>], iteration_bounds = array<i64: 1>, scalar_prefetch = 0 : i64, scratch_operands = 0 : i64, tpu.core_type = #tpu.core_type<tc>, window_params = [{transform_indices = @transform_0, window_bounds = array<i64: 16, 128>}, {transform_indices = @transform_1, window_bounds = array<i64: 16, 128>}, {transform_indices = @transform_2, window_bounds = array<i64: 16, 128>}, {transform_indices = @transform_3, window_bounds = array<i64: 1, 8, 128>}, {transform_indices = @transform_4, window_bounds = array<i64: 1, 8, 128>}]} {
    %c0 = arith.constant 0 : index
    %c0_0 = arith.constant 0 : index
    %0 = vector.load %arg1[%c0, %c0_0] : memref<16x128xf32, #tpu.memory_space<vmem>>, vector<16x128xf32>
    %c0_1 = arith.constant 0 : index
    %c0_2 = arith.constant 0 : index
    %1 = vector.load %arg2[%c0_1, %c0_2] : memref<16x128xf32, #tpu.memory_space<vmem>>, vector<16x128xf32>
    %c0_3 = arith.constant 0 : index
    %c0_4 = arith.constant 0 : index
    %2 = vector.load %arg3[%c0_3, %c0_4] : memref<16x128xf32, #tpu.memory_space<vmem>>, vector<16x128xf32>
    %3 = tpu.iota {dimensions = array<i32: 0>} : vector<16x128xi32>
    %c16_i32 = arith.constant 16 : i32
    %4 = arith.muli %arg0, %c16_i32 : i32
    %c16_i32_5 = arith.constant 16 : i32
    %5 = arith.subi %c16_i32_5, %4 : i32
    %6 = vector.broadcast %5 : i32 to vector<16x128xi32>
    %7 = arith.cmpi slt, %3, %6 : vector<16x128xi32>
    %cst = arith.constant 0.000000e+00 : f32
    %8 = vector.broadcast %cst : f32 to vector<16x128xf32>
    %9 = arith.cmpf ogt, %2, %8 : vector<16x128xf32>
    %10 = arith.andi %9, %7 : vector<16x128xi1>
    %11 = arith.subf %0, %1 : vector<16x128xf32>
    %12 = arith.mulf %11, %11 : vector<16x128xf32>
    %cst_6 = arith.constant 0.000000e+00 : f32
    %13 = vector.broadcast %cst_6 : f32 to vector<16x128xf32>
    %14 = arith.select %10, %12, %13 : vector<16x128xi1>, vector<16x128xf32>
    %15 = arith.extui %10 : vector<16x128xi1> to vector<16x128xi32>
    %16 = arith.sitofp %15 : vector<16x128xi32> to vector<16x128xf32>
    %17 = vector.shape_cast %14 : vector<16x128xf32> to vector<2x8x128xf32>
    %cst_7 = arith.constant dense<0.000000e+00> : vector<8x128xf32>
    %18 = vector.multi_reduction <add>, %17, %cst_7 [0] : vector<2x8x128xf32> to vector<8x128xf32>
    %c0_8 = arith.constant 0 : index
    %c0_9 = arith.constant 0 : index
    %c0_10 = arith.constant 0 : index
    %19 = vector.load %arg4[%c0_8, %c0_9, %c0_10] : memref<1x8x128xf32, #tpu.memory_space<vmem>>, vector<1x8x128xf32>
    %20 = vector.shape_cast %19 : vector<1x8x128xf32> to vector<8x128xf32>
    %21 = vector.shape_cast %18 : vector<8x128xf32> to vector<1x8x128xf32>
    tpu.vector_store %arg4[%c0_8, %c0_9, %c0_10], %21 {strides = array<i32>} : memref<1x8x128xf32, #tpu.memory_space<vmem>>, vector<1x8x128xf32>,
    %22 = vector.shape_cast %16 : vector<16x128xf32> to vector<2x8x128xf32>
    %cst_11 = arith.constant dense<0.000000e+00> : vector<8x128xf32>
    %23 = vector.multi_reduction <add>, %22, %cst_11 [0] : vector<2x8x128xf32> to vector<8x128xf32>
    %c0_12 = arith.constant 0 : index
    %c0_13 = arith.constant 0 : index
    %c0_14 = arith.constant 0 : index
    %24 = vector.load %arg5[%c0_12, %c0_13, %c0_14] : memref<1x8x128xf32, #tpu.memory_space<vmem>>, vector<1x8x128xf32>
    %25 = vector.shape_cast %24 : vector<1x8x128xf32> to vector<8x128xf32>
    %26 = vector.shape_cast %23 : vector<8x128xf32> to vector<1x8x128xf32>
    tpu.vector_store %arg5[%c0_12, %c0_13, %c0_14], %26 {strides = array<i32>} : memref<1x8x128xf32, #tpu.memory_space<vmem>>, vector<1x8x128xf32>,
    return
  }
  func.func @transform_0(%arg0: i32) -> (i32, i32) {
    %c0_i32 = arith.constant 0 : i32
    %c0_i32_0 = arith.constant 0 : i32
    return %arg0, %c0_i32 : i32, i32
  }
  func.func @transform_1(%arg0: i32) -> (i32, i32) {
    %c0_i32 = arith.constant 0 : i32
    %c0_i32_0 = arith.constant 0 : i32
    return %arg0, %c0_i32 : i32, i32
  }
  func.func @transform_2(%arg0: i32) -> (i32, i32) {
    %c0_i32 = arith.constant 0 : i32
    %c0_i32_0 = arith.constant 0 : i32
    return %arg0, %c0_i32 : i32, i32
  }
  func.func @transform_3(%arg0: i32) -> (i32, i32, i32) {
    %c0_i32 = arith.constant 0 : i32
    %c0_i32_0 = arith.constant 0 : i32
    %c0_i32_1 = arith.constant 0 : i32
    return %arg0, %c0_i32, %c0_i32_0 : i32, i32, i32
  }
  func.func @transform_4(%arg0: i32) -> (i32, i32, i32) {
    %c0_i32 = arith.constant 0 : i32
    %c0_i32_0 = arith.constant 0 : i32
    %c0_i32_1 = arith.constant 0 : i32
    return %arg0, %c0_i32, %c0_i32_0 : i32, i32, i32
  }
}

</mosaic_0001>

<bundles_post_ra>
// kernel: tpu_custom_call.1
= control target key start
LH: loop header
LB: loop body
LE: loop exit
PB: predicated region body
PF: predicated region fallthrough
CT: control target
= control target key end

     0   :  { %10 = vsyncpa [#allocation3], 0  ;;  %s287_s0 = inlined_call_operand.hbm [shape: f32[16,128], index: 0, kind: input, shape index: {}]   ;;  %s288_s1 = inlined_call_operand.hbm [shape: f32[16,128], index: 1, kind: input, shape index: {}]   ;;  %s289_s2 = inlined_call_operand.hbm [shape: f32[16,128], index: 2, kind: input, shape index: {}]   ;;  %s290_s3 = inlined_call_operand.hbm [shape: f32[1,8,128], index: 3, kind: output, shape index: {0}]   ;;  %s291_s4 = inlined_call_operand.hbm [shape: f32[1,8,128], index: 4, kind: output, shape index: {1}]  }
   0x1   :  { %11 = vsyncpa [#allocation6], 0 }
   0x2   :  { %12 = vsyncpa [#allocation4], 0 }
   0x3   :  { %13 = vsyncpa [#allocation10], 0  ;;  %s239_s15 = smov [#allocation5]   ;;  %s240_s17 = smov [#allocation2]  }
   0x4   :  { %s31_s16 = sshll.u32 %s239_s15, 4  ;;  %s19_s18 = sshll.u32 %s240_s17, 4  ;;  %s32_s16 = int_to_ptr.vmem [resolvable:$true] %s31_s16  ;;  %s20_s18 = int_to_ptr.vmem [resolvable:$true] %s19_s18 }
   0x5   :  { %s139_s19 = scalar_lea.vmem %s32_s16, 256  ;;  %p144_p1 = scmp.lt.s32.totalorder %s32_s16, %s32_s16 }
   0x6   :  { %p140_p0 = scmp.ne.s32.totalorder %s32_s16, %s139_s19  ;;  %p145_p2 = scmp.lt.s32.totalorder %s139_s19, %s139_s19 }
   0x8   :  { %p146_p3 = por %p145_p2, %p144_p1 }
   0xa   :  { %p147_p4 = pnand %p146_p3, %p140_p0 }
   0xc   :  { %150 = shalt.err (!%p147_p4)
}
   0xd   :  { %s241_s20 = smov 128   ;;  %s242_s21 = smov 8  }
   0xe   :  { %37 = dma.hbm_to_vmem [thread:$0]  %s288_s1, 256, %s32_s16, [#allocation6], %s241_s20, %s241_s20, %s242_s21  }
   0xf   :  { %s159_s24 = scalar_lea.vmem %s20_s18, 256  ;;  %p164_p6 = scmp.lt.s32.totalorder %s20_s18, %s20_s18 }
  0x10   :  { %p160_p5 = scmp.ne.s32.totalorder %s20_s18, %s159_s24  ;;  %p165_p7 = scmp.lt.s32.totalorder %s159_s24, %s159_s24 }
  0x12   :  { %p166_p8 = por %p165_p7, %p164_p6 }
  0x14   :  { %p167_p9 = pnand %p166_p8, %p160_p5 }
  0x16   :  { %170 = shalt.err (!%p167_p9)
}
  0x17   :  { %25 = dma.hbm_to_vmem [thread:$0]  %s287_s0, 256, %s20_s18, [#allocation3], %s241_s20, %s241_s20, %s242_s21  }
  0x18   :  { %s243_s27 = smov [#allocation7]  }
  0x19   :  { %s43_s28 = sshll.u32 %s243_s27, 4  ;;  %s44_s28 = int_to_ptr.vmem [resolvable:$true] %s43_s28 }
  0x1a   :  { %s179_s29 = scalar_lea.vmem %s44_s28, 256  ;;  %p184_p11 = scmp.lt.s32.totalorder %s44_s28, %s44_s28 }
  0x1b   :  { %p180_p10 = scmp.ne.s32.totalorder %s44_s28, %s179_s29  ;;  %p185_p12 = scmp.lt.s32.totalorder %s179_s29, %s179_s29 }
  0x1d   :  { %p186_p13 = por %p185_p12, %p184_p11 }
  0x1f   :  { %p187_p0 = pnand %p186_p13, %p180_p10 }
  0x21   :  { %190 = shalt.err (!%p187_p0)
}
  0x22   :  { %49 = dma.hbm_to_vmem [thread:$0]  %s289_s2, 256, %s44_s28, [#allocation6], %s241_s20, %s241_s20, %s242_s21  }
  0x23   :  { %231 = dma.done.wait [#allocation3], 256  }
  0x24   :  { %232 = vsyncadd [#allocation3], 4294967040 }
  0x25   :  { %233 = dma.done.wait [#allocation6], 512  }
  0x26   :  { %234 = vsyncadd [#allocation6], 4294966784  ;;  %v59_v0 = vld [vmem:[#allocation2] sm:$0xff]  ;;  %v60_v1 = vld [vmem:[#allocation2 + $0x8] sm:$0xff]  ;;  %s244_s0 = smov [#allocation9]   ;;  %v245_v9 = vmov 0.0  }
  0x27   :  { %v61_v2 = vld [vmem:[#allocation5] sm:$0xff]  ;;  %v62_v3 = vld [vmem:[#allocation5 + $0x8] sm:$0xff]  ;;  %v63_v4 = vld [vmem:[#allocation7] sm:$0xff]  ;;  %s107_s5 = sshll.u32 %s244_s0, 4  ;;  %s246_s2 = smov [#allocation8]   ;;  %s108_s5 = int_to_ptr.vmem [resolvable:$true] %s107_s5 }
  0x28   :  { %v64_v5 = vld [vmem:[#allocation7 + $0x8] sm:$0xff]  ;;  %v77_v6 = vsub.f32 %v59_v0, %v61_v2  ;;  %vm73_vm0 = vcmp.gt.f32.partialorder %v63_v4, 0.0  ;;  %v78_v7 = vsub.f32 %v60_v1, %v62_v3  ;;  %s97_s6 = sshll.u32 %s246_s2, 4  ;;  %s191_s7 = scalar_lea.vmem %s108_s5, 128  ;;  %s98_s6 = int_to_ptr.vmem [resolvable:$true] %s97_s6 }
  0x29   :  { %vm74_vm1 = vcmp.gt.f32.partialorder %v64_v5, 0.0  ;;  %v121_v10 = vsel %vm73_vm0, 1.0, %v245_v9  ;;  %p192_p1 = scmp.ne.s32.totalorder %s108_s5, %s191_s7  ;;  %p196_p2 = scmp.lt.s32.totalorder %s108_s5, %s108_s5 }
  0x2a   :  { %v79_v8 = vmul.f32 %v77_v6, %v77_v6  ;;  %v122_v11 = vsel %vm74_vm1, 1.0, %v245_v9  ;;  %v80_v12 = vmul.f32 %v78_v7, %v78_v7  ;;  %p197_p3 = scmp.lt.s32.totalorder %s191_s7, %s191_s7 }
  0x2b   :  { %v89_v13 = vadd.f32 %v122_v11, %v121_v10 }
  0x2c   :  { %v81_v14 = vsel %vm73_vm0, %v79_v8, 0.0  ;;  %v82_v15 = vsel %vm74_vm1, %v80_v12, 0.0  ;;  %p198_p4 = por %p197_p3, %p196_p2 }
  0x2d   :  { %90 = vst [vmem:[#allocation9] sm:$0xff] %v89_v13  ;;  %v87_v16 = vadd.f32 %v82_v15, %v81_v14 }
  0x2e   :  { %p199_p5 = pnand %p198_p4, %p192_p1 }
  0x30   :  { %202 = shalt.err (!%p199_p5)
}
  0x31   :  { %110 = dma.vmem_to_hbm [thread:$0]  %s108_s5, 128, %s291_s4, [#allocation10]   ;;  %88 = vst [vmem:[#allocation8] sm:$0xff] %v87_v16 }
  0x32   :  { %s211_s10 = scalar_lea.vmem %s98_s6, 128  ;;  %p216_p7 = scmp.lt.s32.totalorder %s98_s6, %s98_s6 }
  0x33   :  { %p212_p6 = scmp.ne.s32.totalorder %s98_s6, %s211_s10  ;;  %p217_p8 = scmp.lt.s32.totalorder %s211_s10, %s211_s10 }
  0x35   :  { %p218_p9 = por %p217_p8, %p216_p7 }
  0x37   :  { %p219_p10 = pnand %p218_p9, %p212_p6 }
  0x39   :  { %222 = shalt.err (!%p219_p10)
}
  0x3a   :  { %100 = dma.vmem_to_hbm [thread:$0]  %s98_s6, 128, %s290_s3, [#allocation4]  }
  0x3b   :  { %235 = dma.done.wait [#allocation4], 128  }
  0x3c   :  { %236 = vsyncadd [#allocation4], 4294967168 }
  0x3d   :  { %237 = dma.done.wait [#allocation10], 128  }
  0x3e   :  { %238 = vsyncadd [#allocation10], 4294967168 }
  0x3f   :  { %117 = vsyncpa [#allocation3], 1 }
  0x40   :  { %118 = vsyncpa [#allocation6], 1 }
  0x41   :  { %119 = vsyncpa [#allocation4], 1 }
  0x42   :  { %120 = vsyncpa [#allocation10], 1 }

</bundles_post_ra>
